<compile_context>
chip_gen: v6e
topology: v6e:2x2x1
jax: 0.10.0
libtpu: 0.0.40
codegen_flags: <defaults>
</compile_context>

<pallas_src>
import math
import jax
import jax.numpy as jnp
from jax.experimental import pallas as pl
from jax.experimental.pallas import tpu as pltpu


_INV_SQRT2 = 1.0 / math.sqrt(2.0)


def _gelu_exact(h):
    # exact (erf) GELU in f32 — matches torch.nn.GELU default.
    return 0.5 * h * (1.0 + jax.lax.erf(h * _INV_SQRT2))


def mlp_kernel_fused(x_ref, w1_ref, b1_ref, w2_ref, b2_ref, o_ref):
    """Single reduction step: full hidden dim resident in VMEM."""
    h = jnp.dot(x_ref[...], w1_ref[...], preferred_element_type=jnp.float32)
    h = _gelu_exact(h + b1_ref[...])
    o = jnp.dot(h.astype(w2_ref.dtype), w2_ref[...],
                preferred_element_type=jnp.float32)
    o_ref[...] = (o + b2_ref[...]).astype(o_ref.dtype)


def mlp_kernel_tiled(x_ref, w1_ref, b1_ref, w2_ref, b2_ref, o_ref, acc_ref):
    """Hidden dim tiled: fc2 partials accumulate in a f32 VMEM scratch."""
    h_idx = pl.program_id(1)

    @pl.when(h_idx == 0)
    def _():
        acc_ref[...] = jnp.zeros_like(acc_ref)

    h = jnp.dot(x_ref[...], w1_ref[...], preferred_element_type=jnp.float32)
    h = _gelu_exact(h + b1_ref[...])
    acc_ref[...] += jnp.dot(h.astype(w2_ref.dtype), w2_ref[...],
                            preferred_element_type=jnp.float32)

    @pl.when(h_idx == pl.num_programs(1) - 1)
    def _():
        o_ref[...] = (acc_ref[...] + b2_ref[...]).astype(o_ref.dtype)


def _round_up(n, m):
    return ((n + m - 1) // m) * m


def _pick_h_tile(H, target=512):
    """Hidden tile; prefer a lane-aligned divisor of H, else zero-pad H."""
    if H <= target:
        return H, H
    th = target
    while th >= 128:
        if H % th == 0:
            return th, H
        th -= 128
    return 512, _round_up(H, 512)


def _choose_tiles(M, C, H, O_pad, itemsize, vmem_budget):
    """Pick (TM, M_pad, TH, H_pad) from a rough VMEM model."""

    def weight_bytes(th):
        # double-buffered fc1/fc2 weight slices + bias rows
        return (2 * (C * th + th * O_pad) + 2 * (th + O_pad)) * itemsize

    def row_bytes(th):
        # per token row: x (2 buf) + out (2 buf) + f32 acc + f32 hidden temps (2x)
        return (2 * C + 2 * O_pad) * itemsize + 4 * O_pad + 8 * th

    # Prefer keeping the full hidden dim resident: weights are then DMA'd from
    # HBM once for the whole kernel instead of once per token tile.
    if weight_bytes(H) + 128 * row_bytes(H) <= vmem_budget:
        TH, H_pad = H, H
    else:
        TH, H_pad = _pick_h_tile(H)

    free = max(vmem_budget - weight_bytes(TH), 128 * row_bytes(TH))
    tm_cap = max(128, min(1024, (free // row_bytes(TH)) // 128 * 128))
    if M <= tm_cap:
        return M, M, TH, H_pad          # single token tile, no padding
    for tm in range(tm_cap, 127, -128):
        if M % tm == 0:                 # exact divisor -> no padded rows
            return tm, M, TH, H_pad
    return tm_cap, _round_up(M, tm_cap), TH, H_pad


def mlp_forward(x, w1, b1, w2, b2, *, vmem_budget=40 * 1024 * 1024):
    """x: (B, N, C); w1: (C, H); b1: (H,); w2: (H, O); b2: (O,)."""
    B, N, C = x.shape
    H = w1.shape[1]
    O = w2.shape[1]
    M = B * N
    dtype = x.dtype
    itemsize = jnp.dtype(dtype).itemsize

    O_pad = O if O % 128 == 0 else _round_up(O, 128)  # lane-dense stores
    TM, M_pad, TH, H_pad = _choose_tiles(M, C, H, O_pad, itemsize, vmem_budget)

    x2d = x.reshape(M, C)
    if M_pad != M:
        x2d = jnp.pad(x2d, ((0, M_pad - M), (0, 0)))
    if H_pad != H:
        # Padded hidden units contribute exactly 0: GELU(0) = 0 and the padded
        # fc2 rows are zero.
        w1 = jnp.pad(w1, ((0, 0), (0, H_pad - H)))
        b1 = jnp.pad(b1, (0, H_pad - H))
        w2 = jnp.pad(w2, ((0, H_pad - H), (0, 0)))
    if O_pad != O:
        w2 = jnp.pad(w2, ((0, 0), (0, O_pad - O)))
        b2 = jnp.pad(b2, (0, O_pad - O))
    b1_2d = b1.reshape(1, H_pad)
    b2_2d = b2.reshape(1, O_pad)

    m_tiles = M_pad // TM
    h_tiles = H_pad // TH

    cost = pl.CostEstimate(
        flops=2 * M * H * (C + O),
        transcendentals=M * H,
        bytes_accessed=(M * C + C * H + H + H * O + O + M * O) * itemsize,
    )
    vmem_limit = int(min(56 << 20, max(48 << 20, vmem_budget + (8 << 20))))

    if h_tiles == 1:
        grid_spec = pltpu.PrefetchScalarGridSpec(
            num_scalar_prefetch=0,
            grid=(m_tiles,),
            in_specs=[
                pl.BlockSpec((TM, C), lambda m: (m, 0)),          # x token tile
                pl.BlockSpec((C, H_pad), lambda m: (0, 0)),       # fc1 weights (resident)
                pl.BlockSpec((1, H_pad), lambda m: (0, 0)),       # fc1 bias (resident)
                pl.BlockSpec((H_pad, O_pad), lambda m: (0, 0)),   # fc2 weights (resident)
                pl.BlockSpec((1, O_pad), lambda m: (0, 0)),       # fc2 bias (resident)
            ],
            out_specs=pl.BlockSpec((TM, O_pad), lambda m: (m, 0)),
        )
        kernel = mlp_kernel_fused
        dims = ("parallel",)
    else:
        grid_spec = pltpu.PrefetchScalarGridSpec(
            num_scalar_prefetch=0,
            grid=(m_tiles, h_tiles),
            in_specs=[
                pl.BlockSpec((TM, C), lambda m, h: (m, 0)),       # x token tile
                pl.BlockSpec((C, TH), lambda m, h: (0, h)),       # fc1 weight slice
                pl.BlockSpec((1, TH), lambda m, h: (0, h)),       # fc1 bias slice
                pl.BlockSpec((TH, O_pad), lambda m, h: (h, 0)),   # fc2 weight slice
                pl.BlockSpec((1, O_pad), lambda m, h: (0, 0)),    # fc2 bias (resident)
            ],
            out_specs=pl.BlockSpec((TM, O_pad), lambda m, h: (m, 0)),
            scratch_shapes=[pltpu.VMEM((TM, O_pad), jnp.float32)],
        )
        kernel = mlp_kernel_tiled
        dims = ("parallel", "arbitrary")

    out2d = pl.pallas_call(
        kernel,
        out_shape=jax.ShapeDtypeStruct((M_pad, O_pad), dtype),
        grid_spec=grid_spec,
        compiler_params=pltpu.CompilerParams(
            dimension_semantics=dims,
            vmem_limit_bytes=vmem_limit,
        ),
        cost_estimate=cost,
    )(x2d, w1, b1_2d, w2, b2_2d)

    return out2d[:M, :O].reshape(B, N, O)


def init_linear_params(key, fan_in, fan_out, dtype=jnp.float32):
    """Deterministic init mimicking torch.nn.Linear default (kaiming-uniform)."""
    kw, kb = jax.random.split(key)
    bound = 1.0 / math.sqrt(fan_in)
    # weight stored already transposed: (in, out) so the kernel does x @ W
    w = jax.random.uniform(kw, (fan_in, fan_out), dtype, minval=-bound, maxval=bound)
    b = jax.random.uniform(kb, (fan_out,), dtype, minval=-bound, maxval=bound)
    return w, b


def _reference(x, w1, b1, w2, b2, precision=None):
    B, N, C = x.shape
    h = jnp.dot(x.reshape(-1, C), w1, precision=precision) + b1
    h = 0.5 * h * (1.0 + jax.lax.erf(h / jnp.sqrt(2.0)))
    o = jnp.dot(h, w2, precision=precision) + b2
    return o.reshape(B, N, -1)


if __name__ == "__main__":
    key = jax.random.PRNGKey(0)

    # --- small test (fused single-tile path): B=2, N=8, C=16, H=32, O=16 ---
    k_x, k_fc1, k_fc2, key = jax.random.split(key, 4)
    B, N, C, Hd = 2, 8, 16, 32
    x = jax.random.normal(k_x, (B, N, C), dtype=jnp.float32)
    w1, b1 = init_linear_params(k_fc1, C, Hd)
    w2, b2 = init_linear_params(k_fc2, Hd, C)
    out = jax.block_until_ready(mlp_forward(x, w1, b1, w2, b2))
    ref = _reference(x, w1, b1, w2, b2)
    assert jnp.allclose(out, ref, atol=1e-5, rtol=1e-5), "small-shape mismatch"

    # --- moderate test (fused path, resident weights, O lane padding) ---
    k_x, k_fc1, k_fc2, key = jax.random.split(key, 4)
    B, N, C, Hd, Od = 2, 320, 128, 640, 192
    x = jax.random.normal(k_x, (B, N, C), dtype=jnp.float32)
    w1, b1 = init_linear_params(k_fc1, C, Hd)
    w2, b2 = init_linear_params(k_fc2, Hd, Od)
    out = jax.block_until_ready(mlp_forward(x, w1, b1, w2, b2))
    ref = _reference(x, w1, b1, w2, b2, precision=jax.lax.Precision.HIGHEST)
    assert jnp.allclose(out, ref, atol=5e-3, rtol=5e-3), "fused-shape mismatch"

    # --- tiled test (tiny VMEM budget forces H tiling + M/O padding paths) ---
    k_x, k_fc1, k_fc2, key = jax.random.split(key, 4)
    B, N, C, Hd, Od = 2, 200, 128, 640, 192   # M=400 -> TM=256 (pad 512), TH=128
    x = jax.random.normal(k_x, (B, N, C), dtype=jnp.float32)
    w1, b1 = init_linear_params(k_fc1, C, Hd)
    w2, b2 = init_linear_params(k_fc2, Hd, Od)
    out = jax.block_until_ready(
        mlp_forward(x, w1, b1, w2, b2, vmem_budget=2 * 1024 * 1024))
    ref = _reference(x, w1, b1, w2, b2, precision=jax.lax.Precision.HIGHEST)
    assert jnp.allclose(out, ref, atol=5e-3, rtol=5e-3), "tiled-shape mismatch"

    print("KERNEL_OK")
</pallas_src>

<mosaic_0001>
module attributes {stable_mosaic.version = 11 : i64} {
  func.func @mlp_kernel_fused(%arg0: i32, %arg1: memref<16x16xf32, #tpu.memory_space<vmem>>, %arg2: memref<16x32xf32, #tpu.memory_space<vmem>>, %arg3: memref<1x32xf32, #tpu.memory_space<vmem>>, %arg4: memref<32x128xf32, #tpu.memory_space<vmem>>, %arg5: memref<1x128xf32, #tpu.memory_space<vmem>>, %arg6: memref<16x128xf32, #tpu.memory_space<vmem>>) attributes {dimension_semantics = [#tpu.dimension_semantics<parallel>], iteration_bounds = array<i64: 1>, scalar_prefetch = 0 : i64, scratch_operands = 0 : i64, tpu.core_type = #tpu.core_type<tc>, window_params = [{transform_indices = @transform_0, window_bounds = array<i64: 16, 16>}, {pipeline_mode = #tpu.pipeline_mode<synchronous>, transform_indices = @transform_1, window_bounds = array<i64: 16, 32>}, {pipeline_mode = #tpu.pipeline_mode<synchronous>, transform_indices = @transform_2, window_bounds = array<i64: 1, 32>}, {pipeline_mode = #tpu.pipeline_mode<synchronous>, transform_indices = @transform_3, window_bounds = array<i64: 32, 128>}, {pipeline_mode = #tpu.pipeline_mode<synchronous>, transform_indices = @transform_4, window_bounds = array<i64: 1, 128>}, {transform_indices = @transform_5, window_bounds = array<i64: 16, 128>}]} {
    %c0 = arith.constant 0 : index
    %c0_0 = arith.constant 0 : index
    %0 = vector.load %arg1[%c0, %c0_0] : memref<16x16xf32, #tpu.memory_space<vmem>>, vector<16x16xf32>
    %c0_1 = arith.constant 0 : index
    %c0_2 = arith.constant 0 : index
    %1 = vector.load %arg2[%c0_1, %c0_2] : memref<16x32xf32, #tpu.memory_space<vmem>>, vector<16x32xf32>
    %cst = arith.constant dense<0.000000e+00> : vector<16x32xf32>
    %2 = tpu.matmul %0, %1, %cst {dimension_numbers = #tpu.dot_dimension_numbers<[1], [0], [0], [1], [0, 0, 1, 1], [], []>} : vector<16x16xf32>, vector<16x32xf32>, vector<16x32xf32> -> vector<16x32xf32>
    %c0_3 = arith.constant 0 : index
    %c0_4 = arith.constant 0 : index
    %3 = vector.load %arg3[%c0_3, %c0_4] : memref<1x32xf32, #tpu.memory_space<vmem>>, vector<1x32xf32>
    %4 = vector.broadcast %3 : vector<1x32xf32> to vector<16x32xf32>
    %5 = arith.addf %2, %4 : vector<16x32xf32>
    %cst_5 = arith.constant 5.000000e-01 : f32
    %6 = vector.broadcast %cst_5 : f32 to vector<16x32xf32>
    %7 = arith.mulf %6, %5 : vector<16x32xf32>
    %cst_6 = arith.constant 0.707106769 : f32
    %8 = vector.broadcast %cst_6 : f32 to vector<16x32xf32>
    %9 = arith.mulf %5, %8 : vector<16x32xf32>
    %10 = math.erf %9 : vector<16x32xf32>
    %cst_7 = arith.constant 1.000000e+00 : f32
    %11 = vector.broadcast %cst_7 : f32 to vector<16x32xf32>
    %12 = arith.addf %11, %10 : vector<16x32xf32>
    %13 = arith.mulf %7, %12 : vector<16x32xf32>
    %c0_8 = arith.constant 0 : index
    %c0_9 = arith.constant 0 : index
    %14 = vector.load %arg4[%c0_8, %c0_9] : memref<32x128xf32, #tpu.memory_space<vmem>>, vector<32x128xf32>
    %cst_10 = arith.constant dense<0.000000e+00> : vector<16x128xf32>
    %15 = tpu.matmul %13, %14, %cst_10 {dimension_numbers = #tpu.dot_dimension_numbers<[1], [0], [0], [1], [0, 0, 1, 1], [], []>} : vector<16x32xf32>, vector<32x128xf32>, vector<16x128xf32> -> vector<16x128xf32>
    %c0_11 = arith.constant 0 : index
    %c0_12 = arith.constant 0 : index
    %16 = vector.load %arg5[%c0_11, %c0_12] : memref<1x128xf32, #tpu.memory_space<vmem>>, vector<1x128xf32>
    %17 = vector.broadcast %16 : vector<1x128xf32> to vector<16x128xf32>
    %18 = arith.addf %15, %17 : vector<16x128xf32>
    %c0_13 = arith.constant 0 : index
    %c0_14 = arith.constant 0 : index
    %19 = vector.load %arg6[%c0_13, %c0_14] : memref<16x128xf32, #tpu.memory_space<vmem>>, vector<16x128xf32>
    tpu.vector_store %arg6[%c0_13, %c0_14], %18 {strides = array<i32>} : memref<16x128xf32, #tpu.memory_space<vmem>>, vector<16x128xf32>,
    return
  }
  func.func @transform_0(%arg0: i32) -> (i32, i32) {
    %c0_i32 = arith.constant 0 : i32
    %c0_i32_0 = arith.constant 0 : i32
    return %arg0, %c0_i32 : i32, i32
  }
  func.func @transform_1(%arg0: i32) -> (i32, i32) {
    %c0_i32 = arith.constant 0 : i32
    %c0_i32_0 = arith.constant 0 : i32
    %c0_i32_1 = arith.constant 0 : i32
    return %c0_i32, %c0_i32_0 : i32, i32
  }
  func.func @transform_2(%arg0: i32) -> (i32, i32) {
    %c0_i32 = arith.constant 0 : i32
    %c0_i32_0 = arith.constant 0 : i32
    %c0_i32_1 = arith.constant 0 : i32
    return %c0_i32, %c0_i32_0 : i32, i32
  }
  func.func @transform_3(%arg0: i32) -> (i32, i32) {
    %c0_i32 = arith.constant 0 : i32
    %c0_i32_0 = arith.constant 0 : i32
    %c0_i32_1 = arith.constant 0 : i32
    return %c0_i32, %c0_i32_0 : i32, i32
  }
  func.func @transform_4(%arg0: i32) -> (i32, i32) {
    %c0_i32 = arith.constant 0 : i32
    %c0_i32_0 = arith.constant 0 : i32
    %c0_i32_1 = arith.constant 0 : i32
    return %c0_i32, %c0_i32_0 : i32, i32
  }
  func.func @transform_5(%arg0: i32) -> (i32, i32) {
    %c0_i32 = arith.constant 0 : i32
    %c0_i32_0 = arith.constant 0 : i32
    return %arg0, %c0_i32 : i32, i32
  }
}

</mosaic_0001>

<bundles_post_ra>
// kernel: tpu_custom_call.1
= control target key start
LH: loop header
LB: loop body
LE: loop exit
PB: predicated region body
PF: predicated region fallthrough
CT: control target
= control target key end

     0   :  { %10 = vsyncpa [#allocation3], 0  ;;  %s474_s0 = inlined_call_operand.hbm [shape: f32[16,16], index: 0, kind: input, shape index: {}]   ;;  %s475_s1 = inlined_call_operand.hbm [shape: f32[16,32], index: 1, kind: input, shape index: {}]   ;;  %s476_s2 = inlined_call_operand.vmem [shape: f32[1,32], index: 2, kind: input, shape index: {}]   ;;  %s477_s3 = inlined_call_operand.hbm [shape: f32[32,128], index: 3, kind: input, shape index: {}]   ;;  %s478_s4 = inlined_call_operand.vmem [shape: f32[1,128], index: 4, kind: input, shape index: {}]   ;;  %s479_s5 = inlined_call_operand.hbm [shape: f32[16,128], index: 5, kind: output, shape index: {}]  }
   0x1   :  { %11 = vsyncpa [#allocation6], 0 }
   0x2   :  { %12 = vsyncpa [#allocation4], 0  ;;  %s408_s18 = smov [#allocation5]   ;;  %s409_s20 = smov [#allocation2]  }
   0x3   :  { %s30_s19 = sshll.u32 %s408_s18, 4  ;;  %s18_s21 = sshll.u32 %s409_s20, 4  ;;  %s31_s19 = int_to_ptr.vmem [resolvable:$true] %s30_s19  ;;  %s19_s21 = int_to_ptr.vmem [resolvable:$true] %s18_s21 }
   0x4   :  { %s330_s22 = scalar_lea.vmem %s31_s19, 256  ;;  %p335_p1 = scmp.lt.s32.totalorder %s31_s19, %s31_s19 }
   0x5   :  { %p331_p0 = scmp.ne.s32.totalorder %s31_s19, %s330_s22  ;;  %p336_p2 = scmp.lt.s32.totalorder %s330_s22, %s330_s22 }
   0x7   :  { %p337_p3 = por %p336_p2, %p335_p1 }
   0x9   :  { %p338_p4 = pnand %p337_p3, %p331_p0 }
   0xb   :  { %341 = shalt.err (!%p338_p4)
}
   0xc   :  { %s410_s23 = smov 128   ;;  %s411_s24 = smov 8  }
   0xd   :  { %36 = dma.hbm_to_vmem [thread:$0]  %s475_s1, 256, %s31_s19, [#allocation6], %s410_s23, %s410_s23, %s411_s24  }
   0xe   :  { %s350_s27 = scalar_lea.vmem %s19_s21, 256  ;;  %p355_p6 = scmp.lt.s32.totalorder %s19_s21, %s19_s21 }
   0xf   :  { %p351_p5 = scmp.ne.s32.totalorder %s19_s21, %s350_s27  ;;  %p356_p7 = scmp.lt.s32.totalorder %s350_s27, %s350_s27 }
  0x11   :  { %p357_p8 = por %p356_p7, %p355_p6 }
  0x13   :  { %p358_p9 = pnand %p357_p8, %p351_p5 }
  0x15   :  { %361 = shalt.err (!%p358_p9)
}
  0x16   :  { %24 = dma.hbm_to_vmem [thread:$0]  %s474_s0, 256, %s19_s21, [#allocation3], %s410_s23, %s410_s23, %s411_s24  }
  0x17   :  { %s412_s30 = smov [#allocation7]  }
  0x18   :  { %s44_s6 = sshll.u32 %s412_s30, 4  ;;  %s45_s6 = int_to_ptr.vmem [resolvable:$true] %s44_s6 }
  0x19   :  { %s370_s7 = scalar_lea.vmem %s45_s6, 512  ;;  %p375_p11 = scmp.lt.s32.totalorder %s45_s6, %s45_s6 }
  0x1a   :  { %p371_p10 = scmp.ne.s32.totalorder %s45_s6, %s370_s7  ;;  %p376_p12 = scmp.lt.s32.totalorder %s370_s7, %s370_s7 }
  0x1c   :  { %p377_p13 = por %p376_p12, %p375_p11 }
  0x1e   :  { %p378_p0 = pnand %p377_p13, %p371_p10 }
  0x20   :  { %381 = shalt.err (!%p378_p0)
}
  0x21   :  { %50 = dma.hbm_to_vmem [thread:$0]  %s477_s3, 512, %s45_s6, [#allocation6], %s410_s23, %s410_s23, %s411_s24  }
  0x22   :  { %402 = dma.done.wait [#allocation3], 256  }
  0x23   :  { %403 = vsyncadd [#allocation3], 4294967040 }
  0x24   :  { %404 = dma.done.wait [#allocation6], 768  }
  0x25   :  { %405 = vsyncadd [#allocation6], 4294966528  ;;  %vm73_vm0 = vcmask 130048   ;;  %v65_v0 = vld [vmem:[#allocation5 + $0x8] sm:$0xff]  ;;  %v64_v1 = vld [vmem:[#allocation5] sm:$0xff]  ;;  %vm176_vm1 = vcmask 261120  }
  0x26   :  { %v62_v2 = vld [vmem:[#allocation2] sm:$0xff]  ;;  %294 = vmatprep.subr.mxu0 %v65_v0  ;;  %v63_v3 = vld [vmem:[#allocation2 + $0x8] sm:$0xff]  ;;  %v168_v4 = vld [vmem:[#allocation7 + $0x18] sm:$0xff]  ;;  %s413_s10 = smov [#allocation8]  }
  0x27   :  { %298 = vmatprep.mubr.msk.f32.mxu0 %vm73_vm0, %v62_v2  ;;  %295 = vmatpush3.msra.mxu0 %v65_v0  ;;  %v167_v5 = vld [vmem:[#allocation7 + $0x10] sm:$0xff]  ;;  %v166_v6 = vld [vmem:[#allocation7 + $0x8] sm:$0xff]  ;;  %v165_v7 = vld [vmem:[#allocation7] sm:$0xff]  ;;  %s265_s11 = sshll.u32 %s413_s10, 4  ;;  %s266_s11 = int_to_ptr.vmem [resolvable:$true] %s265_s11 }
  0x28   :  { %296 = vmatprep.subr.mxu0 %v64_v1  ;;  %301 = vmatprep.subr.mxu1 %v168_v4  ;;  %v278_v8 = vld [vmem:[%s476_s2] ss:$0 sm:$0xff]  ;;  %s382_s12 = scalar_lea.vmem %s266_s11, 256  ;;  %p387_p2 = scmp.lt.s32.totalorder %s266_s11, %s266_s11 }
  0x29   :  { %297 = vmatpush3.msra.mxu0 %v64_v1  ;;  %302 = vmatpush3.msra.mxu1 %v168_v4  ;;  %v281_v23 = vld [vmem:[%s478_s4] ss:$0 sm:$0xff]  ;;  %p383_p1 = scmp.ne.s32.totalorder %s266_s11, %s382_s12  ;;  %p388_p3 = scmp.lt.s32.totalorder %s382_s12, %s382_s12 }
  0x2a   :  { %299 = vmatmul.mubr.msk.f32.vlgmr.msra.gmra.mxu0 %vm73_vm0, %v63_v3  ;;  %303 = vmatprep.subr.mxu1 %v167_v5 }
  0x2b   :  { %304 = vmatpush3.msra.mxu1 %v167_v5  ;;  %p389_p4 = por %p388_p3, %p387_p2 }
  0x2c   :  { %305 = vmatprep.subr.mxu1 %v166_v6 }
  0x2d   :  { %306 = vmatpush3.msra.mxu1 %v166_v6  ;;  %p390_p5 = pnand %p389_p4, %p383_p1 }
  0x2e   :  { %307 = vmatprep.subr.mxu1 %v165_v7 }
  0x2f   :  { %308 = vmatpush3.msra.mxu1 %v165_v7 }
  0xea   :  { %v300_v9 = vpop.f32.mrf.mxu0 }
  0xeb   :  { %v152_v10 = vadd.f32 %v300_v9, %v278_v8 }
  0xec   :  { %v146_v11 = vpop.f32.mrf.mxu0 }
  0xed   :  { %v158_v12 = vmul.f32 0.70710677, %v152_v10  ;;  %v147_v13 = vadd.f32 %v278_v8, %v146_v11  ;;  %v156_v20 = vmul.f32 0.5, %v152_v10 }
  0xef   :  { %318 = verf.f32 %v158_v12  ;;  %v157_v14 = vmul.f32 0.70710677, %v147_v13  ;;  %v155_v18 = vmul.f32 0.5, %v147_v13 }
  0xf1   :  { %320 = verf.f32 %v157_v14 }
  0xfc   :  { %v319_v15 = vpop.eup %318 }
  0xfd   :  { %v162_v17 = vadd.f32 1.0, %v319_v15 }
  0xfe   :  { %v321_v16 = vpop.eup %320 }
  0xff   :  { %v161_v19 = vadd.f32 1.0, %v321_v16  ;;  %v164_v22 = vmul.f32 %v162_v17, %v156_v20 }
 0x101   :  { %v163_v21 = vmul.f32 %v161_v19, %v155_v18 }
 0x103   :  { %309 = vmatprep.mubr.msk.f32.mxu1 %vm176_vm1, %v163_v21 }
 0x104   :  { %310 = vmatmul.mubr.msk.f32.vlgmr.msra.gmra.mxu1 %vm176_vm1, %v164_v22 }
 0x1c4   :  { %v311_v24 = vpop.f32.mrf.mxu1 }
 0x1c5   :  { %v255_v25 = vadd.f32 %v311_v24, %v281_v23 }
 0x1c6   :  { %v249_v26 = vpop.f32.mrf.mxu1 }
 0x1c7   :  { %259 = vst [vmem:[#allocation8 + $0x8] sm:$0xff] %v255_v25  ;;  %v250_v27 = vadd.f32 %v281_v23, %v249_v26 }
 0x1c9   :  { %258 = vst [vmem:[#allocation8] sm:$0xff] %v250_v27 }
 0x1ca   :  { %393 = shalt.err (!%p390_p5)
}
 0x1cb   :  { %271 = dma.vmem_to_hbm [thread:$0]  %s266_s11, 256, %s479_s5, [#allocation4], %s410_s23, %s410_s23, %s411_s24  }
 0x1cc   :  { %406 = dma.done.wait [#allocation4], 256  }
 0x1cd   :  { %407 = vsyncadd [#allocation4], 4294967040 }
 0x1ce   :  { %275 = vsyncpa [#allocation3], 1 }
 0x1cf   :  { %276 = vsyncpa [#allocation6], 1 }
 0x1d0   :  { %277 = vsyncpa [#allocation4], 1 }

</bundles_post_ra>
